<compile_context>
chip_gen: v6e
topology: v6e:2x2x1
jax: 0.10.0
libtpu: 0.0.40
codegen_flags: <defaults>
</compile_context>

<pallas_src>
import jax
import jax.numpy as jnp
from jax.experimental import pallas as pl
from jax.experimental.pallas import tpu as pltpu


def _gate_kernel(h_ref, g_ref, o_ref):
    # Elementwise multiply on the current VMEM tile (VPU hot path).
    o_ref[...] = h_ref[...] * g_ref[...]


def _tpu_generation() -> str:
    """Best-effort TPU generation detection for tile sizing; safe fallback."""
    try:
        kind = jax.devices()[0].device_kind.lower()
    except Exception:  # pragma: no cover - defensive, e.g. odd backends
        return "unknown"
    if "v7" in kind or "7x" in kind:
        return "v7x"
    if "v6" in kind:
        return "v6e"
    if "v5e" in kind or "v5 lite" in kind or "v5lite" in kind:
        return "v5e"
    return "unknown"


def gate(h: jax.Array, g: jax.Array, *, min_pallas_bytes: int = 1 << 20) -> jax.Array:
    """Elementwise gate: h * g, computed in a Pallas TPU kernel."""
    assert h.shape == g.shape, (h.shape, g.shape)
    assert h.dtype == g.dtype, (h.dtype, g.dtype)
    orig_shape = h.shape
    total = h.size
    itemsize = jnp.dtype(h.dtype).itemsize

    # Small tensors: kernel launch / DMA setup dwarfs the work and XLA fuses
    # the multiply into neighbors for free.
    if total == 0 or total * itemsize < min_pallas_bytes:
        return h * g

    # Widest lane dim (multiple of 128) that divides the total -> unmasked,
    # fully contiguous loads/stores and fat DMA descriptors, zero padding.
    lane = 0
    for cand in (8192, 4096, 2048, 1024, 512, 256, 128):
        if total % cand == 0:
            lane = cand
            break
    if lane == 0:
        # Ragged total: the fused XLA multiply already hits the HBM roofline.
        # Padding + output slicing would turn the ideal 3N bytes of traffic
        # into ~7N, so we don't take the Pallas path here.
        return h * g

    rows = total // lane
    # Contiguous row-major reshape -> free bitcast at the pallas_call boundary.
    h2 = h.reshape(rows, lane)
    g2 = g.reshape(rows, lane)

    # Generation-aware tile sizing (3 arrays x 2 pipeline buffers per tile).
    gen = _tpu_generation()
    if gen == "v7x":
        tile_bytes = 6 * 1024 * 1024    # 36 MiB double-buffered
        vmem_limit = 48 * 1024 * 1024   # under the 64 MiB physical VMEM
        num_cores = 2                   # 2 TensorCores per chip
    elif gen == "v6e":
        tile_bytes = 4 * 1024 * 1024    # 24 MiB fits the 32 MiB default scope
        vmem_limit = None
        num_cores = 1
    else:  # v5e or unknown: stay inside the 16 MiB default scoped-VMEM.
        tile_bytes = 2 * 1024 * 1024    # 12 MiB double-buffered
        vmem_limit = None
        num_cores = 1

    # Block rows: multiple of 32 -> legal sublane tiling for f32/bf16/int8.
    target_rows = max(32, (tile_bytes // (lane * itemsize)) // 32 * 32)

    if rows <= target_rows:
        if num_cores > 1 and rows >= 64:
            # Never emit a single-block grid on a multi-TC chip: split into
            # (at least) 2 blocks so "parallel" shards them across cores.
            block_rows = max(32, (pl.cdiv(rows, 2) + 31) // 32 * 32)
            if block_rows >= rows:
                block_rows = rows
        else:
            block_rows = rows          # single block == full array dims (legal)
    else:
        block_rows = target_rows       # ragged last block is masked by Pallas
    grid = (pl.cdiv(rows, block_rows),)

    cp_kwargs = dict(
        # Independent grid steps: lets v7x shard them across its 2 TCs;
        # neutral (but harmless) on v5e/v6e.
        dimension_semantics=("parallel",),
    )
    if vmem_limit is not None:
        cp_kwargs["vmem_limit_bytes"] = vmem_limit

    out2 = pl.pallas_call(
        _gate_kernel,
        out_shape=jax.ShapeDtypeStruct((rows, lane), h.dtype),
        grid_spec=pltpu.PrefetchScalarGridSpec(
            num_scalar_prefetch=0,
            grid=grid,
            in_specs=[
                pl.BlockSpec((block_rows, lane), lambda i: (i, 0)),
                pl.BlockSpec((block_rows, lane), lambda i: (i, 0)),
            ],
            out_specs=pl.BlockSpec((block_rows, lane), lambda i: (i, 0)),
        ),
        compiler_params=pltpu.CompilerParams(**cp_kwargs),
    )(h2, g2)

    return out2.reshape(orig_shape)


if __name__ == "__main__":
    key = jax.random.PRNGKey(0)
    k1, k2, k3, k4 = jax.random.split(key, 4)

    # 1) Small NCHW input consistent with the module's usage.
    #    Default path short-circuits to the fused XLA multiply (by design).
    B, C, H, W = 2, 4, 16, 16
    h_small = jax.random.normal(k1, (B, C, H, W), dtype=jnp.float32)
    g_small = jax.random.normal(k2, (B, C, H, W), dtype=jnp.float32)
    out_small = gate(h_small, g_small)
    jax.block_until_ready(out_small)
    ref_small = h_small * g_small
    assert out_small.shape == ref_small.shape and out_small.dtype == ref_small.dtype
    assert jnp.allclose(out_small, ref_small, atol=1e-6, rtol=1e-6)

    # 2) Same small input with the Pallas path forced (exercises the kernel,
    #    single full-extent block).
    out_forced = gate(h_small, g_small, min_pallas_bytes=0)
    jax.block_until_ready(out_forced)
    assert out_forced.shape == ref_small.shape and out_forced.dtype == ref_small.dtype
    assert jnp.allclose(out_forced, ref_small, atol=1e-6, rtol=1e-6)

    # 3) Ragged total (not a multiple of 128): takes the copy-free XLA
    #    fallback instead of padding (perf fix from review).
    h_odd = jax.random.normal(k3, (3, 5, 7, 11), dtype=jnp.float32)
    g_odd = jax.random.normal(k4, (3, 5, 7, 11), dtype=jnp.float32)
    out_odd = gate(h_odd, g_odd, min_pallas_bytes=0)
    jax.block_until_ready(out_odd)
    assert jnp.allclose(out_odd, h_odd * g_odd, atol=1e-6, rtol=1e-6)

    # 4) Multi-block case (several grid steps on v5e / split across cores on
    #    v7x): takes the default Pallas path with generation-sized tiles.
    kb1, kb2 = jax.random.split(k3)
    h_big = jax.random.normal(kb1, (4, 8, 128, 256), dtype=jnp.float32)  # 4 MiB
    g_big = jax.random.normal(kb2, (4, 8, 128, 256), dtype=jnp.float32)
    out_big = gate(h_big, g_big)
    jax.block_until_ready(out_big)
    assert jnp.allclose(out_big, h_big * g_big, atol=1e-6, rtol=1e-6)

    print("KERNEL_OK")
</pallas_src>

<mosaic_0001>
module attributes {stable_mosaic.version = 11 : i64} {
  func.func @_gate_kernel(%arg0: i32, %arg1: memref<1x2048xf32, #tpu.memory_space<vmem>>, %arg2: memref<1x2048xf32, #tpu.memory_space<vmem>>, %arg3: memref<1x2048xf32, #tpu.memory_space<vmem>>) attributes {dimension_semantics = [#tpu.dimension_semantics<parallel>], iteration_bounds = array<i64: 1>, scalar_prefetch = 0 : i64, scratch_operands = 0 : i64, tpu.core_type = #tpu.core_type<tc>, window_params = [{transform_indices = @transform_0, window_bounds = array<i64: 1, 2048>}, {transform_indices = @transform_1, window_bounds = array<i64: 1, 2048>}, {transform_indices = @transform_2, window_bounds = array<i64: 1, 2048>}]} {
    %c0 = arith.constant 0 : index
    %c0_0 = arith.constant 0 : index
    %0 = vector.load %arg1[%c0, %c0_0] : memref<1x2048xf32, #tpu.memory_space<vmem>>, vector<1x2048xf32>
    %c0_1 = arith.constant 0 : index
    %c0_2 = arith.constant 0 : index
    %1 = vector.load %arg2[%c0_1, %c0_2] : memref<1x2048xf32, #tpu.memory_space<vmem>>, vector<1x2048xf32>
    %2 = arith.mulf %0, %1 : vector<1x2048xf32>
    %c0_3 = arith.constant 0 : index
    %c0_4 = arith.constant 0 : index
    %3 = vector.load %arg3[%c0_3, %c0_4] : memref<1x2048xf32, #tpu.memory_space<vmem>>, vector<1x2048xf32>
    tpu.vector_store %arg3[%c0_3, %c0_4], %2 {strides = array<i32>} : memref<1x2048xf32, #tpu.memory_space<vmem>>, vector<1x2048xf32>,
    return
  }
  func.func @transform_0(%arg0: i32) -> (i32, i32) {
    %c0_i32 = arith.constant 0 : i32
    %c0_i32_0 = arith.constant 0 : i32
    return %arg0, %c0_i32 : i32, i32
  }
  func.func @transform_1(%arg0: i32) -> (i32, i32) {
    %c0_i32 = arith.constant 0 : i32
    %c0_i32_0 = arith.constant 0 : i32
    return %arg0, %c0_i32 : i32, i32
  }
  func.func @transform_2(%arg0: i32) -> (i32, i32) {
    %c0_i32 = arith.constant 0 : i32
    %c0_i32_0 = arith.constant 0 : i32
    return %arg0, %c0_i32 : i32, i32
  }
}

</mosaic_0001>

<bundles_post_ra>
// kernel: tpu_custom_call.1
= control target key start
LH: loop header
LB: loop body
LE: loop exit
PB: predicated region body
PF: predicated region fallthrough
CT: control target
= control target key end

     0   :  { %7 = vsyncpa [#allocation3], 0  ;;  %s156_s0 = inlined_call_operand.hbm [shape: f32[1,2048], index: 0, kind: input, shape index: {}]   ;;  %s157_s1 = inlined_call_operand.hbm [shape: f32[1,2048], index: 1, kind: input, shape index: {}]   ;;  %s158_s2 = inlined_call_operand.hbm [shape: f32[1,2048], index: 2, kind: output, shape index: {}]  }
   0x1   :  { %8 = vsyncpa [#allocation6], 0 }
   0x2   :  { %9 = vsyncpa [#allocation4], 0  ;;  %s129_s9 = smov [#allocation2]   ;;  %s130_s11 = smov [#allocation5]  }
   0x3   :  { %s16_s10 = sshll.u32 %s129_s9, 4  ;;  %s26_s12 = sshll.u32 %s130_s11, 4  ;;  %s17_s10 = int_to_ptr.vmem [resolvable:$true] %s16_s10  ;;  %s27_s12 = int_to_ptr.vmem [resolvable:$true] %s26_s12 }
   0x4   :  { %s71_s13 = scalar_lea.vmem %s17_s10, 256  ;;  %p76_p1 = scmp.lt.s32.totalorder %s17_s10, %s17_s10 }
   0x5   :  { %p72_p0 = scmp.ne.s32.totalorder %s17_s10, %s71_s13  ;;  %p77_p2 = scmp.lt.s32.totalorder %s71_s13, %s71_s13 }
   0x7   :  { %p78_p3 = por %p77_p2, %p76_p1 }
   0x9   :  { %p79_p4 = pnand %p78_p3, %p72_p0 }
   0xb   :  { %82 = shalt.err (!%p79_p4)
}
   0xc   :  { %19 = dma.hbm_to_vmem [thread:$0]  %s156_s0, 256, %s17_s10, [#allocation3]  }
   0xd   :  { %s91_s16 = scalar_lea.vmem %s27_s12, 256  ;;  %p96_p6 = scmp.lt.s32.totalorder %s27_s12, %s27_s12 }
   0xe   :  { %p92_p5 = scmp.ne.s32.totalorder %s27_s12, %s91_s16  ;;  %p97_p7 = scmp.lt.s32.totalorder %s91_s16, %s91_s16 }
  0x10   :  { %p98_p8 = por %p97_p7, %p96_p6 }
  0x12   :  { %p99_p9 = pnand %p98_p8, %p92_p5 }
  0x14   :  { %102 = shalt.err (!%p99_p9)
}
  0x15   :  { %29 = dma.hbm_to_vmem [thread:$0]  %s157_s1, 256, %s27_s12, [#allocation6]  }
  0x16   :  { %123 = dma.done.wait [#allocation3], 256  }
  0x17   :  { %124 = vsyncadd [#allocation3], 4294967040 }
  0x18   :  { %125 = dma.done.wait [#allocation6], 256  }
  0x19   :  { %126 = vsyncadd [#allocation6], 4294967040  ;;  %s131_s19 = smov [#allocation7]   ;;  %v36_v0 = vld [vmem:[#allocation2] sm:$0xff]  ;;  %v38_v1 = vld [vmem:[#allocation5] sm:$0xff] }
  0x1a   :  { %s50_s20 = sshll.u32 %s131_s19, 4  ;;  %v37_v2 = vld [vmem:[#allocation2 + $0x8] sm:$0xff]  ;;  %v40_v3 = vmul.f32 %v38_v1, %v36_v0  ;;  %v39_v4 = vld [vmem:[#allocation5 + $0x8] sm:$0xff]  ;;  %s51_s20 = int_to_ptr.vmem [resolvable:$true] %s50_s20 }
  0x1b   :  { %v41_v5 = vmul.f32 %v39_v4, %v37_v2  ;;  %s103_s0 = scalar_lea.vmem %s51_s20, 256  ;;  %p108_p11 = scmp.lt.s32.totalorder %s51_s20, %s51_s20 }
  0x1c   :  { %42 = vst [vmem:[#allocation7] sm:$0xff] %v40_v3  ;;  %p104_p10 = scmp.ne.s32.totalorder %s51_s20, %s103_s0  ;;  %p109_p12 = scmp.lt.s32.totalorder %s103_s0, %s103_s0 }
  0x1d   :  { %43 = vst [vmem:[#allocation7 + $0x8] sm:$0xff] %v41_v5 }
  0x1e   :  { %p110_p13 = por %p109_p12, %p108_p11 }
  0x20   :  { %p111_p0 = pnand %p110_p13, %p104_p10 }
  0x22   :  { %114 = shalt.err (!%p111_p0)
}
  0x23   :  { %53 = dma.vmem_to_hbm [thread:$0]  %s51_s20, 256, %s158_s2, [#allocation4]  }
  0x24   :  { %127 = dma.done.wait [#allocation4], 256  }
  0x25   :  { %128 = vsyncadd [#allocation4], 4294967040 }
  0x26   :  { %57 = vsyncpa [#allocation3], 1 }
  0x27   :  { %58 = vsyncpa [#allocation6], 1 }
  0x28   :  { %59 = vsyncpa [#allocation4], 1 }

</bundles_post_ra>
